<compile_context>
chip_gen: v5e
topology: v5e:2x2
jax: 0.10.0
libtpu: 0.0.40
codegen_flags: <defaults>
</compile_context>

<pallas_src>
import functools

import jax
import jax.numpy as jnp
from jax import lax
from jax.experimental import pallas as pl
from jax.experimental.pallas import tpu as pltpu


def _center_loss_kernel(labels_ref, x_ref, centers_hbm, out_ref,
                        centers_vmem, acc_ref, copy_sem, *,
                        batch, tile, num_classes):
    """One grid step processes a (tile, feat_dim) slab of the batch."""
    i = pl.program_id(0)

    @pl.when(i == 0)
    def _init():
        acc_ref[0] = jnp.float32(0.0)
        # Fetch the centers table HBM -> VMEM exactly once; the scratch
        # persists across all grid steps and is single-buffered.
        cp = pltpu.make_async_copy(centers_hbm, centers_vmem, copy_sem)
        cp.start()
        cp.wait()

    # --- Vectorized gather of each row's class center via one MXU matmul ---
    labels = labels_ref[...]                                        # (tile, 1) i32
    classes = lax.broadcasted_iota(jnp.int32, (tile, num_classes), 1)
    onehot = (labels == classes).astype(jnp.float32)                # (tile, C)
    gathered = jnp.dot(onehot, centers_vmem[...].astype(jnp.float32),
                       preferred_element_type=jnp.float32)          # (tile, D)

    diff = x_ref[...].astype(jnp.float32) - gathered
    d = jnp.sum(diff * diff, axis=-1, keepdims=True)                # (tile, 1)
    d = jnp.clip(d, 1e-12, 1e12)                                    # clamp true entries

    # Mask rows beyond the real batch (ragged last tile).  Edge-block contents
    # are undefined, so mask with a select BEFORE accumulating.
    row = i * tile + lax.broadcasted_iota(jnp.int32, (tile, 1), 0)
    d = jnp.where(row < batch, d, jnp.float32(0.0))

    acc_ref[0] += jnp.sum(d)

    @pl.when(i == pl.num_programs(0) - 1)
    def _finalize():
        # PyTorch clamps AFTER masking, so each of the batch*(num_classes-1)
        # zeroed entries contributes exactly 1e-12 -> analytic correction.
        out_ref[0, 0] = (acc_ref[0] / jnp.float32(batch)
                         + jnp.float32((num_classes - 1) * 1e-12))


def center_loss(x, centers, labels, *, batch_tile=None):
    """x: (B, D) float, centers: (C, D) float, labels: (B,) int -> scalar f32."""
    batch, feat_dim = x.shape
    num_classes, feat_dim_c = centers.shape
    assert feat_dim == feat_dim_c

    labels2d = labels.astype(jnp.int32).reshape(batch, 1)

    # Batch tile: biggest 8-aligned tile whose x block is ~4 MiB (mem-bound
    # regime; amortizes the ~0.35 us/grid-step overhead), capped at 2048 rows
    # and at the (8-rounded-up) batch itself.
    if batch_tile is None:
        bytes_per_row = max(feat_dim * x.dtype.itemsize, 1)
        batch_tile = (4 * 1024 * 1024) // bytes_per_row
    tb = int(min(batch_tile, 2048, ((batch + 7) // 8) * 8))
    tb = max(8, (tb // 8) * 8)
    num_tiles = pl.cdiv(batch, tb)

    kernel = functools.partial(
        _center_loss_kernel, batch=batch, tile=tb, num_classes=num_classes)

    # VMEM budget: double-buffered x + labels tiles, single-buffered centers.
    vmem_need = (2 * tb * feat_dim * x.dtype.itemsize
                 + 2 * tb * 4
                 + num_classes * feat_dim * centers.dtype.itemsize
                 + (2 << 20))
    vmem_limit = int(min(max(vmem_need, 32 * 1024 * 1024), 64 * 1024 * 1024))

    cost = pl.CostEstimate(
        flops=2 * batch * num_classes * feat_dim + 3 * batch * feat_dim,
        transcendentals=0,
        bytes_accessed=int(x.size * x.dtype.itemsize
                           + centers.size * centers.dtype.itemsize
                           + batch * 4 + 4),
    )

    # TODO(synk): on v7x (2 TensorCores) split the batch over a leading size-2
    # "parallel" grid axis with per-core partial sums combined in the wrapper;
    # the shared scalar accumulator below keeps the reduction on one core.
    out = pl.pallas_call(
        kernel,
        out_shape=jax.ShapeDtypeStruct((1, 1), jnp.float32),
        grid_spec=pltpu.PrefetchScalarGridSpec(
            num_scalar_prefetch=0,
            grid=(num_tiles,),
            in_specs=[
                pl.BlockSpec((tb, 1), lambda i: (i, 0)),          # labels
                pl.BlockSpec((tb, feat_dim), lambda i: (i, 0)),   # features
                pl.BlockSpec(memory_space=pl.ANY),                # centers stay in HBM
            ],
            out_specs=pl.BlockSpec(memory_space=pltpu.MemorySpace.SMEM),
            scratch_shapes=[
                pltpu.VMEM((num_classes, feat_dim), centers.dtype),  # resident centers
                pltpu.SMEM((1,), jnp.float32),                       # running sum
                pltpu.SemaphoreType.DMA,                             # centers copy sem
            ],
        ),
        compiler_params=pltpu.CompilerParams(
            # The batch axis carries the running sum -> reduction axis must be
            # "arbitrary" (sequential), not "parallel".
            dimension_semantics=("arbitrary",),
            vmem_limit_bytes=vmem_limit,
        ),
        cost_estimate=cost,
    )(labels2d, x, centers)
    return out[0, 0]


def _reference_center_loss(x, centers, labels):
    """Pure-JAX reference mirroring the PyTorch forward (expansion form)."""
    batch_size = x.shape[0]
    num_classes = centers.shape[0]
    distmat = (
        jnp.sum(x ** 2, axis=1, keepdims=True)
        + jnp.sum(centers ** 2, axis=1, keepdims=True).T
        - 2.0 * x @ centers.T
    )
    classes = jnp.arange(num_classes, dtype=jnp.int32)
    mask = (labels[:, None].astype(jnp.int32) == classes[None, :]).astype(x.dtype)
    dist = jnp.clip(distmat * mask, 1e-12, 1e12)
    return jnp.sum(dist) / batch_size


if __name__ == "__main__":
    # Module defaults: num_classes=10, feat_dim=2. Small batch for the demo.
    num_classes = 10
    feat_dim = 2
    batch_size = 8

    key = jax.random.PRNGKey(0)
    k_x, k_c, k_l = jax.random.split(key, 3)

    x = jax.random.normal(k_x, (batch_size, feat_dim), dtype=jnp.float32)
    # xavier_normal_ on (num_classes, feat_dim): std = sqrt(2 / (fan_in + fan_out))
    xavier_std = (2.0 / (num_classes + feat_dim)) ** 0.5
    centers = xavier_std * jax.random.normal(
        k_c, (num_classes, feat_dim), dtype=jnp.float32)
    labels = jax.random.randint(k_l, (batch_size,), 0, num_classes, dtype=jnp.int32)

    loss = center_loss(x, centers, labels)
    jax.block_until_ready(loss)

    ref = _reference_center_loss(x, centers, labels)
    assert jnp.allclose(loss, ref, rtol=1e-5, atol=1e-5), (loss, ref)

    print("KERNEL_OK")
</pallas_src>

<mosaic_0001>
module attributes {stable_mosaic.version = 11 : i64} {
  func.func @_center_loss_kernel(%arg0: i32, %arg1: memref<8x1xi32, #tpu.memory_space<vmem>>, %arg2: memref<8x2xf32, #tpu.memory_space<vmem>>, %arg3: memref<10x2xf32, #tpu.memory_space<any>>, %arg4: memref<1x1xf32, #tpu.memory_space<smem>>, %arg5: memref<10x2xf32, #tpu.memory_space<vmem>>, %arg6: memref<1xf32, #tpu.memory_space<smem>>, %arg7: memref<!tpu.dma_semaphore, #tpu.memory_space<semaphore_mem>>) attributes {dimension_semantics = [#tpu.dimension_semantics<arbitrary>], iteration_bounds = array<i64: 1>, scalar_prefetch = 0 : i64, scratch_operands = 3 : i64, tpu.core_type = #tpu.core_type<tc>, window_params = [{transform_indices = @transform_0, window_bounds = array<i64: 8, 1>}, {transform_indices = @transform_1, window_bounds = array<i64: 8, 2>}, {}, {transform_indices = @transform_3, window_bounds = array<i64: 1, 1>}]} {
    %c0_i32 = arith.constant 0 : i32
    %0 = arith.cmpi eq, %arg0, %c0_i32 : i32
    %1 = arith.extui %0 : i1 to i32
    %c0_i32_0 = arith.constant 0 : i32
    %2 = arith.cmpi ne, %1, %c0_i32_0 : i32
    scf.if %2 {
      %cst_16 = arith.constant 0.000000e+00 : f32
      %c0_17 = arith.constant 0 : index
      %38 = memref.load %arg6[%c0_17] : memref<1xf32, #tpu.memory_space<smem>>
      memref.store %cst_16, %arg6[%c0_17] : memref<1xf32, #tpu.memory_space<smem>>
      tpu.enqueue_dma source(%arg3 : memref<10x2xf32, #tpu.memory_space<any>>) target(%arg5 : memref<10x2xf32, #tpu.memory_space<vmem>>) target_semaphore(%arg7 : memref<!tpu.dma_semaphore, #tpu.memory_space<semaphore_mem>>)
      tpu.wait_dma2 semaphore(%arg7 : memref<!tpu.dma_semaphore, #tpu.memory_space<semaphore_mem>>) src(%arg3 : memref<10x2xf32, #tpu.memory_space<any>>) dst(%arg5 : memref<10x2xf32, #tpu.memory_space<vmem>>)
    } else {
    }
    %c0 = arith.constant 0 : index
    %c0_1 = arith.constant 0 : index
    %3 = vector.load %arg1[%c0, %c0_1] : memref<8x1xi32, #tpu.memory_space<vmem>>, vector<8x1xi32>
    %4 = tpu.iota {dimensions = array<i32: 1>} : vector<8x10xi32>
    %5 = vector.broadcast %3 : vector<8x1xi32> to vector<8x10xi32>
    %6 = arith.cmpi eq, %5, %4 : vector<8x10xi32>
    %7 = arith.extui %6 : vector<8x10xi1> to vector<8x10xi32>
    %8 = arith.sitofp %7 : vector<8x10xi32> to vector<8x10xf32>
    %c0_2 = arith.constant 0 : index
    %c0_3 = arith.constant 0 : index
    %9 = vector.load %arg5[%c0_2, %c0_3] : memref<10x2xf32, #tpu.memory_space<vmem>>, vector<10x2xf32>
    %cst = arith.constant dense<0.000000e+00> : vector<8x2xf32>
    %10 = tpu.matmul %8, %9, %cst {dimension_numbers = #tpu.dot_dimension_numbers<[1], [0], [0], [1], [0, 0, 1, 1], [], []>} : vector<8x10xf32>, vector<10x2xf32>, vector<8x2xf32> -> vector<8x2xf32>
    %c0_4 = arith.constant 0 : index
    %c0_5 = arith.constant 0 : index
    %11 = vector.load %arg2[%c0_4, %c0_5] : memref<8x2xf32, #tpu.memory_space<vmem>>, vector<8x2xf32>
    %12 = arith.subf %11, %10 : vector<8x2xf32>
    %13 = arith.mulf %12, %12 : vector<8x2xf32>
    %cst_6 = arith.constant dense<0.000000e+00> : vector<8xf32>
    %14 = vector.multi_reduction <add>, %13, %cst_6 [1] : vector<8x2xf32> to vector<8xf32>
    %15 = vector.shape_cast %14 : vector<8xf32> to vector<8x1xf32>
    %cst_7 = arith.constant 9.99999996E-13 : f32
    %cst_8 = arith.constant 9.99999995E+11 : f32
    %16 = vector.broadcast %cst_7 : f32 to vector<8x1xf32>
    %17 = arith.maximumf %16, %15 : vector<8x1xf32>
    %18 = vector.broadcast %cst_8 : f32 to vector<8x1xf32>
    %19 = arith.minimumf %18, %17 : vector<8x1xf32>
    %c8_i32 = arith.constant 8 : i32
    %20 = arith.muli %arg0, %c8_i32 : i32
    %21 = tpu.iota {dimensions = array<i32: 0>} : vector<8x1xi32>
    %22 = vector.broadcast %20 : i32 to vector<8x1xi32>
    %23 = arith.addi %22, %21 : vector<8x1xi32>
    %c8_i32_9 = arith.constant 8 : i32
    %24 = vector.broadcast %c8_i32_9 : i32 to vector<8x1xi32>
    %25 = arith.cmpi slt, %23, %24 : vector<8x1xi32>
    %cst_10 = arith.constant 0.000000e+00 : f32
    %26 = vector.broadcast %cst_10 : f32 to vector<8x1xf32>
    %27 = arith.select %25, %19, %26 : vector<8x1xi1>, vector<8x1xf32>
    %c0_11 = arith.constant 0 : index
    %28 = memref.load %arg6[%c0_11] : memref<1xf32, #tpu.memory_space<smem>>
    %29 = vector.shape_cast %27 : vector<8x1xf32> to vector<1x8x1xf32>
    %cst_12 = arith.constant dense<0.000000e+00> : vector<1xf32>
    %30 = vector.multi_reduction <add>, %29, %cst_12 [1, 2] : vector<1x8x1xf32> to vector<1xf32>
    %31 = vector.shape_cast %30 : vector<1xf32> to vector<1x1x1xf32>
    %32 = vector.extract %31[0, 0, 0] : f32 from vector<1x1x1xf32>
    %33 = arith.addf %28, %32 : f32
    %c0_13 = arith.constant 0 : index
    %34 = memref.load %arg6[%c0_13] : memref<1xf32, #tpu.memory_space<smem>>
    memref.store %33, %arg6[%c0_13] : memref<1xf32, #tpu.memory_space<smem>>
    %c0_i32_14 = arith.constant 0 : i32
    %35 = arith.cmpi eq, %arg0, %c0_i32_14 : i32
    %36 = arith.extui %35 : i1 to i32
    %c0_i32_15 = arith.constant 0 : i32
    %37 = arith.cmpi ne, %36, %c0_i32_15 : i32
    scf.if %37 {
      %c0_16 = arith.constant 0 : index
      %38 = memref.load %arg6[%c0_16] : memref<1xf32, #tpu.memory_space<smem>>
      %cst_17 = arith.constant 8.000000e+00 : f32
      %39 = arith.divf %38, %cst_17 : f32
      %cst_18 = arith.constant 9.000000e-12 : f32
      %40 = arith.addf %39, %cst_18 : f32
      %c0_19 = arith.constant 0 : index
      %c0_20 = arith.constant 0 : index
      %41 = memref.load %arg4[%c0_19, %c0_20] : memref<1x1xf32, #tpu.memory_space<smem>>
      memref.store %40, %arg4[%c0_19, %c0_20] : memref<1x1xf32, #tpu.memory_space<smem>>
    } else {
    }
    return
  }
  func.func @transform_0(%arg0: i32) -> (i32, i32) {
    %c0_i32 = arith.constant 0 : i32
    %c0_i32_0 = arith.constant 0 : i32
    return %arg0, %c0_i32 : i32, i32
  }
  func.func @transform_1(%arg0: i32) -> (i32, i32) {
    %c0_i32 = arith.constant 0 : i32
    %c0_i32_0 = arith.constant 0 : i32
    return %arg0, %c0_i32 : i32, i32
  }
  func.func @transform_3(%arg0: i32) -> (i32, i32) {
    %c0_i32 = arith.constant 0 : i32
    %c0_i32_0 = arith.constant 0 : i32
    %c0_i32_1 = arith.constant 0 : i32
    return %c0_i32, %c0_i32_0 : i32, i32
  }
}

</mosaic_0001>

<bundles_post_ra>
// kernel: tpu_custom_call.1
= control target key start
LH: loop header
LB: loop body
LE: loop exit
PB: predicated region body
PF: predicated region fallthrough
CT: control target
= control target key end

     0   :  { %8 = vsyncpa [#allocation6], 0  ;;  %s238_s0 = inlined_call_operand.vmem [shape: s32[8,1], index: 0, kind: input, shape index: {}]   ;;  %s239_s1 = inlined_call_operand.vmem [shape: f32[8,2], index: 1, kind: input, shape index: {}]   ;;  %s240_s2 = inlined_call_operand.vmem [shape: f32[10,2], index: 2, kind: input, shape index: {}]   ;;  %s241_s3 = inlined_call_operand.hbm [shape: f32[1,1], index: 3, kind: output, shape index: {}]  }
   0x1   :  { %v31_v0 = vld [vmem:[%s240_s2] sm:$0xff]  ;;  %v167_v1 = vld [vmem:[%s240_s2 + $0x8] sm:$0x3] }
   0x2   :  { %32 = vst [vmem:[#allocation2] sm:$0xff] %v31_v0 }
   0x3   :  { %44 = vst [vmem:[#allocation2 + $0x8] sm:$0x3] %v167_v1 }
   0x4   :  { %48 = vsyncadd [#allocation4], 160 }
   0x5   :  { %195 = dma.done.wait [#allocation4], 160 }
   0x6   :  { %196 = vsyncadd [#allocation4], 4294967136  ;;  %v199_v2 = vmov 0   ;;  %vm67_vm0 = vcmask 1041408   ;;  %v52_v3 = vld [vmem:[%s238_s0] sm:$0xff]  ;;  %v53_v6 = vlaneseq  ;;  %vm63_vm1 = vcmask 80896  }
   0x7   :  { %180 = vset.pattern.permute.xlu0 %v199_v2  ;;  %v200_v9 = vmov 0.0   ;;  %v91_v11 = vld [vmem:[%s239_s1] sm:$0xff]  ;;  %vm94_vm3 = vcmask 15360   ;;  %vm108_vm4 = vcmask 7168   ;;  %v201_v20 = vmov 8.0   ;;  %s143_s20 = sshll.u32 %s241_s3, 4  ;;  %s144_s20 = int_to_ptr.hbm [resolvable:$true] %s143_s20 }
   0x8   :  { %56 = vperm.xlu0 %180, %v52_v3   ;;  %v54_v7 = vand.u32 127, %v53_v6  ;;  %181 = vrcp.f32 %v201_v20  ;;  %s202_s24 = smov [#allocation5]  }
   0x9   :  { %v61_v5 = vld [vmem:[#allocation2] sm:$0xff] }
   0xa   :  { %v62_v4 = vld [vmem:[#allocation2 + $0x8] sm:$0x3] }
   0xb   :  { %169 = vmatpush.msk.msra.mxu0 %vm67_vm0, %v62_v4 }
   0xd   :  { %86 = vmatpush.msra.mxu0 %v61_v5 }
   0xe   :  { %v182_v21 = vpop.eup %181 }
   0xf   :  { %v127_v22 = vmul.f32 8.0, %v182_v21  ;;  %vm131_vm5 = vweird.f32 %v182_v21 }
  0x11   :  { %v128_v23 = vsub.f32 1.0, %v127_v22 }
  0x13   :  { %v129_v27 = vmul.f32 %v182_v21, %v128_v23 }
  0x15   :  { %v130_v30 = vadd.f32 %v182_v21, %v129_v27 }
  0x17   :  { %v132_v33 = vsel %vm131_vm5, %v182_v21, %v130_v30 }
  0x7a   :  { %v57_v8 = vpop.permute.xlu0 %56 }
  0x7b   :  { %vm58_vm2 = vcmp.eq.s32.totalorder %v57_v8, %v54_v7 }
  0x7c   :  { %v168_v10 = vsel %vm58_vm2, 1.0, %v200_v9 }
  0x7d   :  { %170 = vmatmul.msk.f32.vlgmr.msra.gmra.mxu0 %vm63_vm1, %v168_v10 }
  0xfa   :  { %v88_v12 = vpop.f32.mrf.mxu0 }
  0xfb   :  { %v92_v13 = vsub.f32 %v91_v11, %v88_v12 }
  0xfd   :  { %v93_v14 = vmul.f32 %v92_v13, %v92_v13 }
  0xff   :  { %v95_v15 = vsel %vm94_vm3, %v93_v14, 0.0 }
 0x100   :  { %96 = vadd.xlane.f32.xlu0 %v95_v15 }
 0x173   :  { %v97_v16 = vpop.xlane.xlu0 %96 }
 0x174   :  { %v98_v17 = vmax.f32 %v97_v16, 1e-12 }
 0x176   :  { %v99_v18 = vmin.f32 %v98_v17, 1e+12 }
 0x178   :  { %v109_v19 = vsel %vm108_vm4, %v99_v18, 0.0 }
 0x179   :  { %110 = vadd.xlane.f32.xlu1 %v109_v19 }
 0x1ec   :  { %v111_v24 = vpop.xlane.xlu1 %110 }
 0x1ed   :  { %v112_v25 = vrot.slane %v111_v24, 4 }
 0x1ef   :  { %v113_v26 = vadd.f32 %v112_v25, %v111_v24 }
 0x1f1   :  { %v114_v28 = vrot.slane %v113_v26, 2 }
 0x1f3   :  { %v115_v29 = vadd.f32 %v114_v28, %v113_v26 }
 0x1f5   :  { %v116_v31 = vrot.slane %v115_v29, 1 }
 0x1f7   :  { %v117_v32 = vadd.f32 %v116_v31, %v115_v29 }
 0x1f9   :  { %172 = vpush %v117_v32 }
 0x1fa   :  { %174 = vpush %v132_v33 }
 0x22a   :  { %s173_s0 = spop %172 }
 0x22b   :  { %s175_s21 = spop %174 }
 0x22c   :  { %s134_s22 = smul.f32 %s175_s21, %s173_s0 }
 0x22e   :  { %s135_s23 = sadd.f32 9e-12, %s134_s22 }
 0x230   :  { %137 = sst [smem:[#allocation5]] %s135_s23 }
 0x231   :  { %146 = dma.smem_to_hbm %s202_s24, 16, %s144_s20, [#allocation6]  }
 0x232   :  { %197 = dma.done.wait [#allocation6], 16  }
 0x233   :  { %198 = vsyncadd [#allocation6], 4294967280 }
 0x234   :  { %151 = sfence }
 0x235   :  { %152 = vsyncpa [#allocation6], 1 }
 0x236   :  { %153 = vsyncmov [#allocation4] }
 0x239   :  { %s154_s25 = vpop.sfrf %153 }
 0x23a   :  { %p171_p0 = scmp.ne.s32.totalorder %s154_s25, 0 }
 0x23c   :  { %158 = shalt.err (%p171_p0)  }

</bundles_post_ra>
